<compile_context>
chip_gen: v7x
topology: tpu7x:2x2x1
jax: 0.10.0
libtpu: 0.0.40
codegen_flags: <defaults>
</compile_context>

<pallas_src>
import functools
import math

import numpy as np
import jax
import jax.numpy as jnp
from jax.experimental import pallas as pl
from jax.experimental.pallas import tpu as pltpu


def _xy_outer_sum_kernel(ox_ref, oy_ref, out_ref):
    """One row tile: out[c, r, w] = OX[c, w] + OY[c, r] (streaming VPU add)."""
    # (C, 1, W) + (C, TH, 1) -> (C, TH, W); write is lane-dense (full W last dim).
    out_ref[...] = ox_ref[...] + oy_ref[...]


def _pe_half_params(Ch):
    """Per-channel (freq, phase) for one PE half; cos x == sin(x + pi/2)."""
    n = max(Ch, 1)
    k = np.arange(n)
    base = (k - (k % 2)).astype(np.float64)                # 0,0,2,2,4,4,...
    freq = np.exp(-base * (math.log(10000.0) / n))
    phase = np.where(k % 2 == 0, 0.0, math.pi / 2.0)
    amp = 1.0 / math.sqrt(n)
    return freq[:Ch].astype(np.float32), phase[:Ch].astype(np.float32), np.float32(amp)


def _pick_row_tile(C, H, W, target_bytes=2 << 20):
    """Row-tile height: multiple of 8 dividing H, ~target_bytes output blocks,
    and at least 2 grid steps whenever H allows (v7x megacore)."""
    if H % 8 != 0:
        return H                        # full-extent rows: always a legal block
    row_bytes = 4 * C * W
    th = (target_bytes // row_bytes) // 8 * 8
    th = max(8, min(H, th))
    if H >= 32:                         # prefer >=4 grid steps
        th = min(th, max(8, (H // 4) // 8 * 8))
    elif H >= 16:                       # at least 2 grid steps
        th = min(th, max(8, (H // 2) // 8 * 8))
    while H % th != 0:                  # shrink to a divisor of H (stops at 8)
        th -= 8
    return th


@functools.partial(jax.jit, static_argnames=("C", "H", "W"))
def xy_encoder_forward(scale, conv_weight, conv_bias, C, H, W):
    """Pallas implementation of XYEncoder.forward. Returns (C, H, W) float32."""
    Cx = (C + 1) // 2
    Cy = C // 2

    fx, px, ax = _pe_half_params(Cx)
    fy, py, ay = _pe_half_params(Cy)

    # Per-axis pixel coordinates (host constants; no per-pixel work anywhere).
    jc = (np.arange(W, dtype=np.float64) + 0.5 - W / 2.0).astype(np.float32)  # (W,)
    ic = (H / 2.0 - np.arange(H, dtype=np.float64) - 0.5).astype(np.float32)  # (H,)

    scale = jnp.asarray(scale, jnp.float32)
    sx2 = scale[0] * scale[0]
    sy2 = scale[1] * scale[1]

    # Tiny separable PE tables: x_pe depends only on the column, y_pe only on
    # the row.  cos is folded in as a +pi/2 phase -> a single sin per entry.
    x_pe = jnp.sin(sx2 * jnp.asarray(fx)[:, None] * jnp.asarray(jc)[None, :]
                   + jnp.asarray(px)[:, None])                                # (Cx, W)
    y_pe = jnp.sin(sy2 * jnp.asarray(fy)[:, None] * jnp.asarray(ic)[None, :]
                   + jnp.asarray(py)[:, None])                                # (Cy, H)

    # Fold the 1/sqrt(Ch) amplitude and the 1x1 conv into two tiny matrices:
    #   out[o, i, j] = OX[o, j] + OY[o, i]       (exact: conv1x1 is linear)
    w = jnp.asarray(conv_weight, jnp.float32).reshape(C, C)
    b = jnp.asarray(conv_bias, jnp.float32)
    ox = ((w[:, :Cx] * ax) @ x_pe).reshape(C, 1, W)                           # (C,1,W)
    oy = ((w[:, Cx:] * ay) @ y_pe + b[:, None]).reshape(C, H, 1)              # (C,H,1)

    TH = _pick_row_tile(C, H, W)
    grid = (H // TH,)

    # Conservative double-buffered VMEM estimate (OY's lane dim pads to 128);
    # only ever raises the limit above the 32 MiB default, capped for v7x.
    pad_th = ((TH + 7) // 8) * 8
    pad_w = ((W + 127) // 128) * 128
    vmem_need = 2 * 4 * (C * pad_th * pad_w + C * pad_w + C * pad_th * 128) + (2 << 20)
    vmem_limit = int(min(max(vmem_need, 32 << 20), 64 << 20))

    return pl.pallas_call(
        _xy_outer_sum_kernel,
        out_shape=jax.ShapeDtypeStruct((C, H, W), jnp.float32),
        grid=grid,
        in_specs=[
            pl.BlockSpec((C, 1, W), lambda n: (0, 0, 0)),    # OX: broadcast over rows
            pl.BlockSpec((C, TH, 1), lambda n: (0, n, 0)),   # OY: this row tile
        ],
        out_specs=pl.BlockSpec((C, TH, W), lambda n: (0, n, 0)),
        compiler_params=pltpu.CompilerParams(
            dimension_semantics=("parallel",),
            vmem_limit_bytes=vmem_limit,
        ),
    )(ox, oy)


def xy_encoder_reference(scale, conv_weight, conv_bias, C, H, W):
    """Pure numpy re-implementation of the PyTorch forward (for verification)."""
    scale = np.asarray(scale, np.float64)
    i = np.arange(H, dtype=np.float64)[:, None].repeat(W, axis=1)
    j = np.arange(W, dtype=np.float64)[None, :].repeat(H, axis=0)
    x_range = scale[0] * scale[0] * (j + 0.5 - W / 2.0)
    y_range = scale[1] * scale[1] * (H / 2.0 - i - 0.5)

    def compute_pe(distance, Ch):
        pe = np.zeros((Ch, H, W))
        c = np.arange(Ch)
        div_sin = np.exp(-c[::2] * (math.log(10000.0) / Ch))
        div_cos = div_sin if Ch % 2 == 0 else div_sin[:-1]
        pe[::2] = np.sin(distance[None] * div_sin[:, None, None]) / math.sqrt(Ch)
        pe[1::2] = np.cos(distance[None] * div_cos[:, None, None]) / math.sqrt(Ch)
        return pe

    x_pe = compute_pe(x_range, (C + 1) // 2)
    y_pe = compute_pe(y_range, C // 2)
    pe = np.concatenate([x_pe, y_pe], axis=0)                      # (C, H, W)
    w = np.asarray(conv_weight, np.float64).reshape(C, C)
    out = np.einsum("oc,chw->ohw", w, pe) + np.asarray(conv_bias)[:, None, None]
    return out.astype(np.float32)


if __name__ == "__main__":
    C, H, W = 8, 16, 16                        # dim=8 XYEncoder, 16x16 feature map

    key = jax.random.PRNGKey(0)
    kx, ks, kw, kb = jax.random.split(key, 4)

    # x only contributes its shape to the forward pass (module returns dis_pe).
    x = jax.random.normal(kx, (C, H, W), dtype=jnp.float32)
    scale = jax.random.uniform(ks, (2,), minval=0.5, maxval=1.5, dtype=jnp.float32)

    # Deterministic synthetic Conv2d(dim, dim, kernel_size=1) parameters.
    conv_weight = jax.random.normal(kw, (C, C, 1, 1), dtype=jnp.float32) / math.sqrt(C)
    conv_bias = jax.random.normal(kb, (C,), dtype=jnp.float32) * 0.1

    Cs, Hs, Ws = x.shape
    out = xy_encoder_forward(scale, conv_weight, conv_bias, C=Cs, H=Hs, W=Ws)
    out = jax.block_until_ready(out)

    ref = xy_encoder_reference(np.asarray(scale), np.asarray(conv_weight),
                               np.asarray(conv_bias), C, H, W)
    np.testing.assert_allclose(np.asarray(out), ref, rtol=1e-4, atol=1e-4)

    print("KERNEL_OK")
</pallas_src>

<mosaic_0001>
module attributes {stable_mosaic.version = 11 : i64} {
  func.func @_xy_outer_sum_kernel(%arg0: i32, %arg1: memref<8x1x16xf32, #tpu.memory_space<vmem>>, %arg2: memref<8x8x1xf32, #tpu.memory_space<vmem>>, %arg3: memref<8x8x16xf32, #tpu.memory_space<vmem>>) attributes {dimension_semantics = [#tpu.dimension_semantics<parallel>], iteration_bounds = array<i64: 2>, scalar_prefetch = 0 : i64, scratch_operands = 0 : i64, tpu.core_type = #tpu.core_type<tc>, window_params = [{pipeline_mode = #tpu.pipeline_mode<synchronous>, transform_indices = @transform_0, window_bounds = array<i64: 8, 1, 16>}, {transform_indices = @transform_1, window_bounds = array<i64: 8, 8, 1>}, {transform_indices = @transform_2, window_bounds = array<i64: 8, 8, 16>}]} {
    %c0 = arith.constant 0 : index
    %c0_0 = arith.constant 0 : index
    %c0_1 = arith.constant 0 : index
    %0 = vector.load %arg1[%c0, %c0_0, %c0_1] : memref<8x1x16xf32, #tpu.memory_space<vmem>>, vector<8x1x16xf32>
    %c0_2 = arith.constant 0 : index
    %c0_3 = arith.constant 0 : index
    %c0_4 = arith.constant 0 : index
    %1 = vector.load %arg2[%c0_2, %c0_3, %c0_4] : memref<8x8x1xf32, #tpu.memory_space<vmem>>, vector<8x8x1xf32>
    %2 = vector.broadcast %0 : vector<8x1x16xf32> to vector<8x8x16xf32>
    %3 = vector.broadcast %1 : vector<8x8x1xf32> to vector<8x8x16xf32>
    %4 = arith.addf %2, %3 : vector<8x8x16xf32>
    %c0_5 = arith.constant 0 : index
    %c0_6 = arith.constant 0 : index
    %c0_7 = arith.constant 0 : index
    %5 = vector.load %arg3[%c0_5, %c0_6, %c0_7] : memref<8x8x16xf32, #tpu.memory_space<vmem>>, vector<8x8x16xf32>
    tpu.vector_store %arg3[%c0_5, %c0_6, %c0_7], %4 {strides = array<i32>} : memref<8x8x16xf32, #tpu.memory_space<vmem>>, vector<8x8x16xf32>,
    return
  }
  func.func @transform_0(%arg0: i32) -> (i32, i32, i32) {
    %c0_i32 = arith.constant 0 : i32
    %c0_i32_0 = arith.constant 0 : i32
    %c0_i32_1 = arith.constant 0 : i32
    %c0_i32_2 = arith.constant 0 : i32
    return %c0_i32, %c0_i32_0, %c0_i32_1 : i32, i32, i32
  }
  func.func @transform_1(%arg0: i32) -> (i32, i32, i32) {
    %c0_i32 = arith.constant 0 : i32
    %c0_i32_0 = arith.constant 0 : i32
    %c0_i32_1 = arith.constant 0 : i32
    return %c0_i32, %arg0, %c0_i32_0 : i32, i32, i32
  }
  func.func @transform_2(%arg0: i32) -> (i32, i32, i32) {
    %c0_i32 = arith.constant 0 : i32
    %c0_i32_0 = arith.constant 0 : i32
    %c0_i32_1 = arith.constant 0 : i32
    return %c0_i32, %arg0, %c0_i32_0 : i32, i32, i32
  }
}

</mosaic_0001>

<bundles_post_ra>
// kernel: xy_encoder_forward.1
= control target key start
LH: loop header
LB: loop body
LE: loop exit
PB: predicated region body
PF: predicated region fallthrough
CT: control target
= control target key end

     0   :  { %7 = vsyncpa [#allocation4], 0  ;;  %s699_s0 = inlined_call_operand.vmem [shape: f32[8,1,16], index: 0, kind: input, shape index: {}]   ;;  %s700_s1 = inlined_call_operand.vmem [shape: f32[8,16,1], index: 1, kind: input, shape index: {}]   ;;  %s701_s2 = inlined_call_operand.hbm [shape: f32[8,16,16], index: 2, kind: output, shape index: {}]  }
   0x1   :  { %9 = vsyncpa [#allocation4 + $0x1], 0  ;;  %s555_s9 = smov 0   ;;  %s557_s10 = smov 0  }
   0x2   :  { %s559_s11 = smov 0   ;;  %s561_s12 = smov 0  }
   0x3 LB: > { %s405_s13 = sadd.s32 4294967295, %s533_s12   ;;  %s406_s14 = sadd.s32 4294967294, %s533_s12   ;;  %s533_s12 = sphi %s561_s12, %s707_s12   ;;  %s529_s11 = sphi %s559_s11, %s706_s11   ;;  %s525_s10 = sphi %s557_s10, %s705_s10   ;;  %s521_s9 = sphi %s555_s9, %s704_s9  }
   0x4   : > { %s578_s15 = sadd.s32 1, %s533_s12   ;;  %s43_s16 = sadd.s32 1, %s529_s11 }
   0x5   : > { %s40_s17 = ssub.s32 %s533_s12, %s578_s15  ;;  %p50_p0 = scmp.ne.s32.totalorder %s529_s11, %s525_s10 }
   0x6   : > { %p41_p1 = scmp.eq.s32.totalorder %s40_s17, 0  ;;  %p51_p2 = scmp.eq.s32.totalorder %s533_s12, 0 }
   0x7   : > { %p80_p3 = scmp.eq.s32.totalorder %s405_s13, 1  ;;  %p85_p4 = scmp.ne.s32.totalorder %s525_s10, %s521_s9 }
   0x8   : > { %s591_s18 = scalar_select %p41_p1, %s529_s11, %s43_s16  }
   0x9   : > { %p52_p5 = por %p51_p2, %p50_p0  ;;  %p593_p6 = por %p80_p3, %p50_p0 }
   0xa   : > { %p86_p7 = scmp.eq.s32.totalorder %s406_s14, 1  ;;  %p408_p9 = scmp.ge.s32.totalorder %s533_s12, 2 }
   0xc   : > { %p597_p8 = por %p86_p7, %p85_p4  ;;  %105 = sbr.rel (%p408_p9) target bundleno = 27 (0x1b), region = 20 }
  0x13   : > { %108 = sbr.rel (!%p52_p5) target bundleno = 27 (0x1b), region = 24  ;;  %s110_s21 = sand.u32 (%p52_p5), 1, %s529_s11  }
  0x14   : > { %s410_s22 = sshll.u32 (%p52_p5), %s533_s12, 3  ;;  %s409_s23 = sshll.u32 (%p52_p5), %s110_s21, 6 }
  0x15   : > { %s114_s26 = scalar_lea.vmem (%p52_p5), %s700_s1, %s410_s22  ;;  %s112_s27 = scalar_lea.vmem (%p52_p5), [#allocation2], %s409_s23 }
  0x16   : > { %v156_v0 = vld [vmem:[%s114_s26] sm:$0xff] (%p52_p5)  ;;  %v158_v1 = vld [vmem:[%s114_s26 + $0x10] sm:$0xff] (%p52_p5) }
  0x17   : > { %v160_v2 = vld [vmem:[%s114_s26 + $0x20] sm:$0xff] (%p52_p5)  ;;  %157 = vst [vmem:[%s112_s27] sm:$0xff] (%p52_p5), %v156_v0  ;;  %159 = vst [vmem:[%s112_s27 + $0x8] sm:$0xff] (%p52_p5), %v158_v1  ;;  %v162_v3 = vld [vmem:[%s114_s26 + $0x30] sm:$0xff] (%p52_p5) }
  0x18   : > { %161 = vst [vmem:[%s112_s27 + $0x10] sm:$0xff] (%p52_p5), %v160_v2  ;;  %v164_v4 = vld [vmem:[%s114_s26 + $0x40] sm:$0xff] (%p52_p5)  ;;  %v166_v5 = vld [vmem:[%s114_s26 + $0x50] sm:$0xff] (%p52_p5)  ;;  %163 = vst [vmem:[%s112_s27 + $0x18] sm:$0xff] (%p52_p5), %v162_v3 }
  0x19   : > { %165 = vst [vmem:[%s112_s27 + $0x20] sm:$0xff] (%p52_p5), %v164_v4  ;;  %167 = vst [vmem:[%s112_s27 + $0x28] sm:$0xff] (%p52_p5), %v166_v5  ;;  %v168_v6 = vld [vmem:[%s114_s26 + $0x60] sm:$0xff] (%p52_p5)  ;;  %v170_v7 = vld [vmem:[%s114_s26 + $0x70] sm:$0xff] (%p52_p5) }
  0x1a   : > { %169 = vst [vmem:[%s112_s27 + $0x30] sm:$0xff] %v168_v6  ;;  %171 = vst [vmem:[%s112_s27 + $0x38] sm:$0xff] %v170_v7 }
  0x1b PF: > { %p411_p10 = scmp.ge.s32.totalorder %s533_s12, 1  ;;  %p176_p11 = scmp.lt.s32.totalorder %s533_s12, 3 }
  0x1d   : > { %p177_p12 = pnand %p411_p10, %p176_p11 }
  0x1e   : > { %s183_s28 = sand.u32 (!%p177_p12), 1, %s525_s10   ;;  %v535_v8 = vmov (!%p177_p12), 0   ;;  %v416_v17 = vld [vmem:[%s699_s0 + $0x2] ss:$0 sm:$0xff] (!%p177_p12)  ;;  %v414_v18 = vld [vmem:[%s699_s0] ss:$0 sm:$0xff] (!%p177_p12) }
  0x1f   : > { %180 = sbr.rel (%p177_p12) target bundleno = 192 (0xc0), region = 62  ;;  %470 = vset.pattern.permute.xlu1 (!%p177_p12), %v535_v8  ;;  %469 = vset.pattern.permute.xlu0 (!%p177_p12), %v535_v8  ;;  %s412_s29 = sshll.u32 (!%p177_p12), %s183_s28, 6  ;;  %vm316_vm0 = vcmask (!%p177_p12), 130048   ;;  %v417_v23 = vld [vmem:[%s699_s0 + $0x3] ss:$0 sm:$0xff] (!%p177_p12) }
  0x20   : > { %s185_s30 = scalar_lea.vmem (!%p177_p12), [#allocation2], %s412_s29  ;;  %v415_v24 = vld [vmem:[%s699_s0 + $0x1] ss:$0 sm:$0xff] (!%p177_p12)  ;;  %s203_s17 = scalar_lea.vmem (!%p177_p12), [#allocation3], %s412_s29  ;;  %v419_v29 = vld [vmem:[%s699_s0 + $0x5] ss:$0 sm:$0xff] (!%p177_p12) }
  0x21   : > { %v214_v9 = vld [vmem:[%s185_s30 + $0x10] sm:$0xff] (!%p177_p12)  ;;  %v212_v10 = vld [vmem:[%s185_s30] sm:$0xff] (!%p177_p12)  ;;  %v215_v11 = vld [vmem:[%s185_s30 + $0x18] sm:$0xff] (!%p177_p12)  ;;  %s338_s25 = sshll.u32 (!%p177_p12), %s203_s17, 4  ;;  %s423_s26 = sshll.u32 (!%p177_p12), %s405_s13, 7  ;;  %s644_s25 = int_to_ptr.vmem [resolvable:$true] %s338_s25 }
  0x22   : > { %280 = vperm.xlu1 (!%p177_p12), %470, %v214_v9   ;;  %270 = vperm.xlu0 (!%p177_p12), %469, %v212_v10   ;;  %v213_v12 = vld [vmem:[%s185_s30 + $0x8] sm:$0xff] (!%p177_p12)  ;;  %v216_v14 = vld [vmem:[%s185_s30 + $0x20] sm:$0xff] (!%p177_p12)  ;;  %v219_v15 = vld [vmem:[%s185_s30 + $0x38] sm:$0xff] (!%p177_p12)  ;;  %s651_s5 = scalar_lea.hbm (!%p177_p12), %s701_s2, %s423_s26  ;;  %s657_s6 = scalar_lea.sflag (!%p177_p12), [#allocation4], %s183_s28 }
  0x23   : > { %v217_v13 = vld [vmem:[%s185_s30 + $0x28] sm:$0xff] (!%p177_p12)  ;;  %v218_v16 = vld [vmem:[%s185_s30 + $0x30] sm:$0xff] (!%p177_p12)  ;;  %v418_v30 = vld [vmem:[%s699_s0 + $0x4] ss:$0 sm:$0xff] (!%p177_p12)  ;;  %s471_s7 = scalar_lea.vmem (!%p177_p12), %s644_s25, 1024  ;;  %s536_s8 = smov (!%p177_p12), [#allocation3]  }
  0x24   : > { %v421_v35 = vld [vmem:[%s699_s0 + $0x7] ss:$0 sm:$0xff] (!%p177_p12)  ;;  %v420_v36 = vld [vmem:[%s699_s0 + $0x6] ss:$0 sm:$0xff] (!%p177_p12)  ;;  %p472_p13 = scmp.ne.s32.totalorder (!%p177_p12), %s644_s25, %s471_s7  ;;  %s475_s14 = sshll.u32 (!%p177_p12), %s536_s8, 4  ;;  %s476_s14 = int_to_ptr.vmem [resolvable:$false] %s475_s14 }
  0x25   : > { %s477_s16 = scalar_lea.vmem (!%p177_p12), %s476_s14, 2048  ;;  %p478_p2 = scmp.lt.s32.totalorder (!%p177_p12), %s644_s25, %s476_s14 }
  0x26   : > { %285 = vperm.xlu1 %470, %v215_v11   ;;  %275 = vperm.xlu0 %469, %v213_v12   ;;  %p473_p0 = pnand %p472_p13, %p593_p6  ;;  %p479_p3 = scmp.lt.s32.totalorder %s477_s16, %s471_s7 }
  0x28   : > { %p474_p1 = pneg %p473_p0  ;;  %p480_p4 = por %p479_p3, %p478_p2 }
  0x2a   : > { %295 = vperm.xlu1 %470, %v217_v13   ;;  %290 = vperm.xlu0 %469, %v216_v14   ;;  %p481_p5 = pnand %p480_p4, %p474_p1 }
  0x2e   : > { %305 = vperm.xlu1 %470, %v219_v15   ;;  %300 = vperm.xlu0 %469, %v218_v16  }
  0xa1   : > { %v281_v19 = vpop.permute.xlu1 %280  ;;  %v271_v20 = vpop.permute.xlu0 %270 }
  0xa2   : > { %v310_v21 = vadd.f32 %v416_v17, %v281_v19  ;;  %v308_v22 = vadd.f32 %v414_v18, %v271_v20 }
  0xa4   : > { %319 = vst.msk [vmem:[%s203_s17 + $0x10] sm:$0xff] %vm316_vm0, %v310_v21  ;;  %317 = vst.msk [vmem:[%s203_s17] sm:$0xff] %vm316_vm0, %v308_v22 }
  0xa5   : > { %v286_v25 = vpop.permute.xlu1 %285  ;;  %v276_v26 = vpop.permute.xlu0 %275 }
  0xa6   : > { %v311_v27 = vadd.f32 %v417_v23, %v286_v25  ;;  %v309_v28 = vadd.f32 %v415_v24, %v276_v26 }
  0xa8   : > { %320 = vst.msk [vmem:[%s203_s17 + $0x18] sm:$0xff] %vm316_vm0, %v311_v27  ;;  %318 = vst.msk [vmem:[%s203_s17 + $0x8] sm:$0xff] %vm316_vm0, %v309_v28 }
  0xa9   : > { %v296_v31 = vpop.permute.xlu1 %295  ;;  %v291_v32 = vpop.permute.xlu0 %290 }
  0xaa   : > { %v313_v33 = vadd.f32 %v419_v29, %v296_v31  ;;  %v312_v34 = vadd.f32 %v418_v30, %v291_v32 }
  0xac   : > { %322 = vst.msk [vmem:[%s203_s17 + $0x28] sm:$0xff] %vm316_vm0, %v313_v33  ;;  %321 = vst.msk [vmem:[%s203_s17 + $0x20] sm:$0xff] %vm316_vm0, %v312_v34 }
  0xad   : > { %v306_v37 = vpop.permute.xlu1 %305  ;;  %v301_v38 = vpop.permute.xlu0 %300 }
  0xae   : > { %v315_v39 = vadd.f32 %v421_v35, %v306_v37  ;;  %v314_v40 = vadd.f32 %v420_v36, %v301_v38 }
  0xb0   : > { %324 = vst.msk [vmem:[%s203_s17 + $0x38] sm:$0xff] %vm316_vm0, %v315_v39  ;;  %323 = vst.msk [vmem:[%s203_s17 + $0x30] sm:$0xff] %vm316_vm0, %v314_v40 }
  0xb1   : > { %484 = shalt.err (!%p481_p5)
}
  0xb2   : > { %s485_s28 = scalar_lea.hbm %s651_s5, 1024  ;;  %s489_s22 = scalar_lea.hbm %s701_s2, 2048 }
  0xb3   : > { %p486_p7 = scmp.ne.s32.totalorder %s651_s5, %s485_s28  ;;  %p490_p12 = scmp.lt.u32.totalorder %s651_s5, %s701_s2 }
  0xb4   : > { %p491_p13 = scmp.lt.u32.totalorder %s489_s22, %s485_s28  ;;  %p493_p1 = scmp.lt.u32.totalorder %s485_s28, %s651_s5 }
  0xb5   : > { %p487_p10 = pnand %p486_p7, %p593_p6 }
  0xb6   : > { %p492_p0 = por %p491_p13, %p490_p12 }
  0xb7   : > { %p488_p11 = pneg %p487_p10 }
  0xb8   : > { %p494_p2 = por %p493_p1, %p492_p0 }
  0xba   : > { %p495_p3 = pnand %p494_p2, %p488_p11 }
  0xbc   : > { %498 = shalt.err (!%p495_p3)
}
  0xbd   : > { %s537_s26 = smov 128   ;;  %s538_s27 = smov 256  }
  0xbe   : > { %s539_s29 = smov 8  }
  0xbf   : > { %426 = dma.vmem_to_hbm [thread:$0]  (%p593_p6), %s644_s25, 1024, %s651_s5, %s657_s6, %s537_s26, %s538_s27, %s539_s29  }
  0xc0 PF: > { %s353_s30 = sand.u32 1, %s521_s9   ;;  %p429_p4 = pnand %p408_p9, %p597_p8 }
  0xc1   : > { %s354_s3 = scalar_lea.sflag [#allocation4], %s353_s30 }
  0xc2   : > { %516 = dma.done.wait (!%p429_p4), %s354_s3, 1024  }
  0xc3   : > { %518 = vsyncadd (!%p429_p4), %s354_s3, 4294966272  ;;  %p12_p5 = scmp.ge.s32.totalorder %s578_s15, 4   ;;  %s704_s9 = smov %s525_s10 }
  0xc4   : > { %s705_s10 = smov %s529_s11  ;;  %s706_s11 = smov %s591_s18 }
  0xc5   : > { %s707_s12 = smov %s578_s15  ;;  %14 = sbr.rel (!%p12_p5) target bundleno = 3 (0x3), region = 106 }
  0xcc   :  { %359 = vsyncpa [#allocation4], 1 }
  0xcd   :  { %361 = vsyncpa [#allocation4 + $0x1], 1 }

</bundles_post_ra>
